<compile_context>
chip_gen: v6e
topology: v6e:2x2x1
jax: 0.10.0
libtpu: 0.0.40
codegen_flags: <defaults>
</compile_context>

<pallas_src>
import jax
import jax.numpy as jnp
from jax.experimental import pallas as pl
from jax.experimental.pallas import tpu as pltpu


def _round_up(x, m):
    return (x + m - 1) // m * m


def _resblock_kernel(x_ref, g_ref, beta_ref, w1_ref, b1_ref, w2_ref, b2_ref,
                     o_ref, xn_ref, acc_ref):
    # grid = (row_tiles, f_tiles); k is the d_ff reduction-ish axis (last, "arbitrary").
    k = pl.program_id(1)

    @pl.when(k == 0)
    def _():
        # LayerNorm in f32 (eps = 1e-5, biased variance -> matches torch.nn.LayerNorm).
        x = x_ref[...].astype(jnp.float32)
        mean = jnp.mean(x, axis=-1, keepdims=True)
        var = jnp.mean((x - mean) ** 2, axis=-1, keepdims=True)
        xn = (x - mean) * jax.lax.rsqrt(var + 1e-5)
        xn = xn * g_ref[...] + beta_ref[...]
        xn_ref[...] = xn.astype(jnp.bfloat16)      # reused across all F-chunks
        acc_ref[...] = jnp.zeros_like(acc_ref)

    # FF over one F-chunk: (tm, D) @ (D, tF) -> relu -> (tm, tF) @ (tF, D), f32 accumulate.
    h = jnp.dot(xn_ref[...], w1_ref[...], preferred_element_type=jnp.float32)
    h = jnp.maximum(h + b1_ref[...], 0.0)
    acc_ref[...] += jnp.dot(h.astype(jnp.bfloat16), w2_ref[...],
                            preferred_element_type=jnp.float32)

    @pl.when(k == pl.num_programs(1) - 1)
    def _():
        # Residual add + second-linear bias (dropout = identity at inference).
        o_ref[...] = (x_ref[...].astype(jnp.float32)
                      + acc_ref[...] + b2_ref[...]).astype(o_ref.dtype)


def residual_block(x, gamma, beta, w1, b1, w2, b2, *, tm=None, tf=None):
    """x: (B, S, D). Returns (B, S, D) = x + FF(LayerNorm(x))."""
    B, S, D = x.shape
    F = w1.shape[1]
    N = B * S

    # Row tile: 512 fills the MXU on all generations (multiple of 128 for v5e, 256 for
    # v6e/v7x); shrink (to a multiple of 8) only for tiny inputs. Per-chip tuning can
    # override via tm=.
    if tm is None:
        tm = min(512, _round_up(N, 8))
    # F tile: keep the (tm, tf) f32 intermediate `h` bounded when d_ff is large.
    if tf is None:
        tf = F if F <= 512 else 512

    N_pad = _round_up(N, tm)
    F_pad = _round_up(F, tf)

    x2 = x.reshape(N, D)
    if N_pad != N:
        x2 = jnp.pad(x2, ((0, N_pad - N), (0, 0)))

    # bf16 weights: native MXU dtype on v5e/v6e/v7x and half the VMEM residency.
    w1p = w1.astype(jnp.bfloat16)
    w2p = w2.astype(jnp.bfloat16)
    b1p = b1.astype(jnp.float32)
    if F_pad != F:
        # Zero padding along F is exact: relu(0 + 0) = 0 columns hit zero W2 rows.
        w1p = jnp.pad(w1p, ((0, 0), (0, F_pad - F)))
        w2p = jnp.pad(w2p, ((0, F_pad - F), (0, 0)))
        b1p = jnp.pad(b1p, (0, F_pad - F))

    g2 = gamma.reshape(1, D).astype(jnp.float32)
    be2 = beta.reshape(1, D).astype(jnp.float32)
    b1_2 = b1p.reshape(1, F_pad)
    b2_2 = b2.reshape(1, D).astype(jnp.float32)

    grid = (N_pad // tm, F_pad // tf)

    # VMEM budget: double-buffered blocks + scratch + live intermediate, capped at 64 MiB
    # so it is valid on v7x (64 MiB physical) as well as v5e/v6e (128 MiB).
    f32b, bf16b = 4, 2
    itemsize = x.dtype.itemsize
    needed = (
        2 * tm * D * itemsize                              # x blocks
        + 2 * tm * D * itemsize                            # out blocks
        + 2 * 3 * D * f32b                                 # gamma, beta, b2
        + 2 * (D * tf * bf16b + tf * D * bf16b + tf * f32b)  # W1, W2, b1 chunks
        + tm * D * (bf16b + f32b)                          # xn + acc scratch
        + tm * tf * f32b                                   # h intermediate
    )
    vmem_limit = int(min(64 * 2**20, max(32 * 2**20, 2 * needed)))

    flops = 4 * N_pad * D * F_pad + 10 * N_pad * D
    bytes_accessed = (2 * N_pad * D * itemsize
                      + (D * F_pad + F_pad * D) * bf16b
                      + (2 * D + F_pad + D) * f32b)

    out = pl.pallas_call(
        _resblock_kernel,
        out_shape=jax.ShapeDtypeStruct((N_pad, D), x.dtype),
        grid_spec=pltpu.PrefetchScalarGridSpec(
            num_scalar_prefetch=0,
            grid=grid,
            in_specs=[
                pl.BlockSpec((tm, D), lambda i, k: (i, 0)),    # x rows (resident across k)
                pl.BlockSpec((1, D), lambda i, k: (0, 0)),     # gamma
                pl.BlockSpec((1, D), lambda i, k: (0, 0)),     # beta
                pl.BlockSpec((D, tf), lambda i, k: (0, k)),    # W1 F-chunk (bf16)
                pl.BlockSpec((1, tf), lambda i, k: (0, k)),    # b1 F-chunk
                pl.BlockSpec((tf, D), lambda i, k: (k, 0)),    # W2 F-chunk (bf16)
                pl.BlockSpec((1, D), lambda i, k: (0, 0)),     # b2
            ],
            out_specs=pl.BlockSpec((tm, D), lambda i, k: (i, 0)),
            scratch_shapes=[
                pltpu.VMEM((tm, D), jnp.bfloat16),   # LayerNorm output, reused across k
                pltpu.VMEM((tm, D), jnp.float32),    # f32 accumulator for FF output
            ],
        ),
        compiler_params=pltpu.CompilerParams(
            dimension_semantics=("parallel", "arbitrary"),
            vmem_limit_bytes=vmem_limit,
        ),
        cost_estimate=pl.CostEstimate(
            flops=flops, transcendentals=N_pad, bytes_accessed=bytes_accessed),
    )(x2, g2, be2, w1p, b1_2, w2p, b2_2)

    if N_pad != N:
        out = out[:N]
    return out.reshape(B, S, D)


def _reference(x, gamma, beta, w1, b1, w2, b2):
    xf = x.astype(jnp.float32)
    mean = jnp.mean(xf, axis=-1, keepdims=True)
    var = jnp.mean((xf - mean) ** 2, axis=-1, keepdims=True)
    xn = (xf - mean) * jax.lax.rsqrt(var + 1e-5) * gamma + beta
    h = jnp.maximum(xn @ w1 + b1, 0.0)
    return xf + h @ w2 + b2


if __name__ == "__main__":
    # Small shapes consistent with the module: batch=2, seq=8, d_model=32, d_ff=64
    B, S, D, F = 2, 8, 32, 64
    key = jax.random.PRNGKey(0)
    k_x, k_w1, k_b1, k_w2, k_b2 = jax.random.split(key, 5)

    x = jax.random.normal(k_x, (B, S, D), dtype=jnp.float32)

    # LayerNorm params (torch default init: weight=1, bias=0)
    gamma = jnp.ones((D,), dtype=jnp.float32)
    beta = jnp.zeros((D,), dtype=jnp.float32)

    # Linear params, deterministic uniform init ~ torch's kaiming-uniform-ish bounds
    lim1 = 1.0 / (D ** 0.5)
    lim2 = 1.0 / (F ** 0.5)
    w1 = jax.random.uniform(k_w1, (D, F), minval=-lim1, maxval=lim1, dtype=jnp.float32)
    b1 = jax.random.uniform(k_b1, (F,), minval=-lim1, maxval=lim1, dtype=jnp.float32)
    w2 = jax.random.uniform(k_w2, (F, D), minval=-lim2, maxval=lim2, dtype=jnp.float32)
    b2 = jax.random.uniform(k_b2, (D,), minval=-lim2, maxval=lim2, dtype=jnp.float32)

    out = residual_block(x, gamma, beta, w1, b1, w2, b2)
    out = jax.block_until_ready(out)

    ref = _reference(x, gamma, beta, w1, b1, w2, b2)
    # bf16 MXU operands introduce ~1e-2-level rounding vs the f32 reference.
    assert jnp.allclose(out, ref, atol=3e-2, rtol=3e-2), "mismatch vs reference"

    print("KERNEL_OK")
</pallas_src>

<mosaic_0001>
module attributes {stable_mosaic.version = 11 : i64} {
  func.func @_resblock_kernel(%arg0: i32, %arg1: i32, %arg2: memref<16x32xf32, #tpu.memory_space<vmem>>, %arg3: memref<1x32xf32, #tpu.memory_space<vmem>>, %arg4: memref<1x32xf32, #tpu.memory_space<vmem>>, %arg5: memref<32x64xbf16, #tpu.memory_space<vmem>>, %arg6: memref<1x64xf32, #tpu.memory_space<vmem>>, %arg7: memref<64x32xbf16, #tpu.memory_space<vmem>>, %arg8: memref<1x32xf32, #tpu.memory_space<vmem>>, %arg9: memref<16x32xf32, #tpu.memory_space<vmem>>, %arg10: memref<16x32xbf16, #tpu.memory_space<vmem>>, %arg11: memref<16x32xf32, #tpu.memory_space<vmem>>) attributes {dimension_semantics = [#tpu.dimension_semantics<parallel>, #tpu.dimension_semantics<arbitrary>], iteration_bounds = array<i64: 1, 1>, scalar_prefetch = 0 : i64, scratch_operands = 2 : i64, tpu.core_type = #tpu.core_type<tc>, window_params = [{transform_indices = @transform_0, window_bounds = array<i64: 16, 32>}, {pipeline_mode = #tpu.pipeline_mode<synchronous>, transform_indices = @transform_1, window_bounds = array<i64: 1, 32>}, {pipeline_mode = #tpu.pipeline_mode<synchronous>, transform_indices = @transform_2, window_bounds = array<i64: 1, 32>}, {transform_indices = @transform_3, window_bounds = array<i64: 32, 64>}, {transform_indices = @transform_4, window_bounds = array<i64: 1, 64>}, {transform_indices = @transform_5, window_bounds = array<i64: 64, 32>}, {pipeline_mode = #tpu.pipeline_mode<synchronous>, transform_indices = @transform_6, window_bounds = array<i64: 1, 32>}, {transform_indices = @transform_7, window_bounds = array<i64: 16, 32>}]} {
    %c0_i32 = arith.constant 0 : i32
    %0 = arith.cmpi eq, %arg1, %c0_i32 : i32
    %1 = arith.extui %0 : i1 to i32
    %c0_i32_0 = arith.constant 0 : i32
    %2 = arith.cmpi ne, %1, %c0_i32_0 : i32
    scf.if %2 {
      %c0_16 = arith.constant 0 : index
      %c0_17 = arith.constant 0 : index
      %20 = vector.load %arg2[%c0_16, %c0_17] : memref<16x32xf32, #tpu.memory_space<vmem>>, vector<16x32xf32>
      %cst_18 = arith.constant dense<0.000000e+00> : vector<16xf32>
      %21 = vector.multi_reduction <add>, %20, %cst_18 [1] : vector<16x32xf32> to vector<16xf32>
      %22 = vector.shape_cast %21 : vector<16xf32> to vector<16x1xf32>
      %cst_19 = arith.constant 3.200000e+01 : f32
      %23 = vector.broadcast %cst_19 : f32 to vector<16x1xf32>
      %24 = arith.divf %22, %23 : vector<16x1xf32>
      %25 = vector.broadcast %24 : vector<16x1xf32> to vector<16x32xf32>
      %26 = arith.subf %20, %25 : vector<16x32xf32>
      %27 = arith.mulf %26, %26 : vector<16x32xf32>
      %cst_20 = arith.constant dense<0.000000e+00> : vector<16xf32>
      %28 = vector.multi_reduction <add>, %27, %cst_20 [1] : vector<16x32xf32> to vector<16xf32>
      %29 = vector.shape_cast %28 : vector<16xf32> to vector<16x1xf32>
      %cst_21 = arith.constant 3.200000e+01 : f32
      %30 = vector.broadcast %cst_21 : f32 to vector<16x1xf32>
      %31 = arith.divf %29, %30 : vector<16x1xf32>
      %32 = vector.broadcast %24 : vector<16x1xf32> to vector<16x32xf32>
      %33 = arith.subf %20, %32 : vector<16x32xf32>
      %cst_22 = arith.constant 9.99999974E-6 : f32
      %34 = vector.broadcast %cst_22 : f32 to vector<16x1xf32>
      %35 = arith.addf %31, %34 : vector<16x1xf32>
      %36 = math.rsqrt %35 : vector<16x1xf32>
      %37 = vector.broadcast %36 : vector<16x1xf32> to vector<16x32xf32>
      %38 = arith.mulf %33, %37 : vector<16x32xf32>
      %c0_23 = arith.constant 0 : index
      %c0_24 = arith.constant 0 : index
      %39 = vector.load %arg3[%c0_23, %c0_24] : memref<1x32xf32, #tpu.memory_space<vmem>>, vector<1x32xf32>
      %40 = vector.broadcast %39 : vector<1x32xf32> to vector<16x32xf32>
      %41 = arith.mulf %38, %40 : vector<16x32xf32>
      %c0_25 = arith.constant 0 : index
      %c0_26 = arith.constant 0 : index
      %42 = vector.load %arg4[%c0_25, %c0_26] : memref<1x32xf32, #tpu.memory_space<vmem>>, vector<1x32xf32>
      %43 = vector.broadcast %42 : vector<1x32xf32> to vector<16x32xf32>
      %44 = arith.addf %41, %43 : vector<16x32xf32>
      %45 = arith.truncf %44 : vector<16x32xf32> to vector<16x32xbf16>
      %c0_27 = arith.constant 0 : index
      %c0_28 = arith.constant 0 : index
      %46 = vector.load %arg10[%c0_27, %c0_28] : memref<16x32xbf16, #tpu.memory_space<vmem>>, vector<16x32xbf16>
      tpu.vector_store %arg10[%c0_27, %c0_28], %45 {strides = array<i32>} : memref<16x32xbf16, #tpu.memory_space<vmem>>, vector<16x32xbf16>,
      %cst_29 = arith.constant 0.000000e+00 : f32
      %47 = vector.broadcast %cst_29 : f32 to vector<16x32xf32>
      %c0_30 = arith.constant 0 : index
      %c0_31 = arith.constant 0 : index
      %48 = vector.load %arg11[%c0_30, %c0_31] : memref<16x32xf32, #tpu.memory_space<vmem>>, vector<16x32xf32>
      tpu.vector_store %arg11[%c0_30, %c0_31], %47 {strides = array<i32>} : memref<16x32xf32, #tpu.memory_space<vmem>>, vector<16x32xf32>,
    } else {
    }
    %c0 = arith.constant 0 : index
    %c0_1 = arith.constant 0 : index
    %3 = vector.load %arg10[%c0, %c0_1] : memref<16x32xbf16, #tpu.memory_space<vmem>>, vector<16x32xbf16>
    %c0_2 = arith.constant 0 : index
    %c0_3 = arith.constant 0 : index
    %4 = vector.load %arg5[%c0_2, %c0_3] : memref<32x64xbf16, #tpu.memory_space<vmem>>, vector<32x64xbf16>
    %cst = arith.constant dense<0.000000e+00> : vector<16x64xf32>
    %5 = tpu.matmul %3, %4, %cst {dimension_numbers = #tpu.dot_dimension_numbers<[1], [0], [0], [1], [0, 0, 1, 1], [], []>} : vector<16x32xbf16>, vector<32x64xbf16>, vector<16x64xf32> -> vector<16x64xf32>
    %c0_4 = arith.constant 0 : index
    %c0_5 = arith.constant 0 : index
    %6 = vector.load %arg6[%c0_4, %c0_5] : memref<1x64xf32, #tpu.memory_space<vmem>>, vector<1x64xf32>
    %7 = vector.broadcast %6 : vector<1x64xf32> to vector<16x64xf32>
    %8 = arith.addf %5, %7 : vector<16x64xf32>
    %cst_6 = arith.constant 0.000000e+00 : f32
    %9 = vector.broadcast %cst_6 : f32 to vector<16x64xf32>
    %10 = arith.maximumf %8, %9 : vector<16x64xf32>
    %c0_7 = arith.constant 0 : index
    %c0_8 = arith.constant 0 : index
    %11 = vector.load %arg11[%c0_7, %c0_8] : memref<16x32xf32, #tpu.memory_space<vmem>>, vector<16x32xf32>
    %12 = arith.truncf %10 : vector<16x64xf32> to vector<16x64xbf16>
    %c0_9 = arith.constant 0 : index
    %c0_10 = arith.constant 0 : index
    %13 = vector.load %arg7[%c0_9, %c0_10] : memref<64x32xbf16, #tpu.memory_space<vmem>>, vector<64x32xbf16>
    %cst_11 = arith.constant dense<0.000000e+00> : vector<16x32xf32>
    %14 = tpu.matmul %12, %13, %cst_11 {dimension_numbers = #tpu.dot_dimension_numbers<[1], [0], [0], [1], [0, 0, 1, 1], [], []>} : vector<16x64xbf16>, vector<64x32xbf16>, vector<16x32xf32> -> vector<16x32xf32>
    %15 = arith.addf %11, %14 : vector<16x32xf32>
    %c0_12 = arith.constant 0 : index
    %c0_13 = arith.constant 0 : index
    %16 = vector.load %arg11[%c0_12, %c0_13] : memref<16x32xf32, #tpu.memory_space<vmem>>, vector<16x32xf32>
    tpu.vector_store %arg11[%c0_12, %c0_13], %15 {strides = array<i32>} : memref<16x32xf32, #tpu.memory_space<vmem>>, vector<16x32xf32>,
    %c0_i32_14 = arith.constant 0 : i32
    %17 = arith.cmpi eq, %arg1, %c0_i32_14 : i32
    %18 = arith.extui %17 : i1 to i32
    %c0_i32_15 = arith.constant 0 : i32
    %19 = arith.cmpi ne, %18, %c0_i32_15 : i32
    scf.if %19 {
      %c0_16 = arith.constant 0 : index
      %c0_17 = arith.constant 0 : index
      %20 = vector.load %arg2[%c0_16, %c0_17] : memref<16x32xf32, #tpu.memory_space<vmem>>, vector<16x32xf32>
      %c0_18 = arith.constant 0 : index
      %c0_19 = arith.constant 0 : index
      %21 = vector.load %arg11[%c0_18, %c0_19] : memref<16x32xf32, #tpu.memory_space<vmem>>, vector<16x32xf32>
      %22 = arith.addf %20, %21 : vector<16x32xf32>
      %c0_20 = arith.constant 0 : index
      %c0_21 = arith.constant 0 : index
      %23 = vector.load %arg8[%c0_20, %c0_21] : memref<1x32xf32, #tpu.memory_space<vmem>>, vector<1x32xf32>
      %24 = vector.broadcast %23 : vector<1x32xf32> to vector<16x32xf32>
      %25 = arith.addf %22, %24 : vector<16x32xf32>
      %c0_22 = arith.constant 0 : index
      %c0_23 = arith.constant 0 : index
      %26 = vector.load %arg9[%c0_22, %c0_23] : memref<16x32xf32, #tpu.memory_space<vmem>>, vector<16x32xf32>
      tpu.vector_store %arg9[%c0_22, %c0_23], %25 {strides = array<i32>} : memref<16x32xf32, #tpu.memory_space<vmem>>, vector<16x32xf32>,
    } else {
    }
    return
  }
  func.func @transform_0(%arg0: i32, %arg1: i32) -> (i32, i32) {
    %c0_i32 = arith.constant 0 : i32
    %c0_i32_0 = arith.constant 0 : i32
    return %arg0, %c0_i32 : i32, i32
  }
  func.func @transform_1(%arg0: i32, %arg1: i32) -> (i32, i32) {
    %c0_i32 = arith.constant 0 : i32
    %c0_i32_0 = arith.constant 0 : i32
    %c0_i32_1 = arith.constant 0 : i32
    return %c0_i32, %c0_i32_0 : i32, i32
  }
  func.func @transform_2(%arg0: i32, %arg1: i32) -> (i32, i32) {
    %c0_i32 = arith.constant 0 : i32
    %c0_i32_0 = arith.constant 0 : i32
    %c0_i32_1 = arith.constant 0 : i32
    return %c0_i32, %c0_i32_0 : i32, i32
  }
  func.func @transform_3(%arg0: i32, %arg1: i32) -> (i32, i32) {
    %c0_i32 = arith.constant 0 : i32
    %c0_i32_0 = arith.constant 0 : i32
    return %c0_i32, %arg1 : i32, i32
  }
  func.func @transform_4(%arg0: i32, %arg1: i32) -> (i32, i32) {
    %c0_i32 = arith.constant 0 : i32
    %c0_i32_0 = arith.constant 0 : i32
    return %c0_i32, %arg1 : i32, i32
  }
  func.func @transform_5(%arg0: i32, %arg1: i32) -> (i32, i32) {
    %c0_i32 = arith.constant 0 : i32
    %c0_i32_0 = arith.constant 0 : i32
    return %arg1, %c0_i32 : i32, i32
  }
  func.func @transform_6(%arg0: i32, %arg1: i32) -> (i32, i32) {
    %c0_i32 = arith.constant 0 : i32
    %c0_i32_0 = arith.constant 0 : i32
    %c0_i32_1 = arith.constant 0 : i32
    return %c0_i32, %c0_i32_0 : i32, i32
  }
  func.func @transform_7(%arg0: i32, %arg1: i32) -> (i32, i32) {
    %c0_i32 = arith.constant 0 : i32
    %c0_i32_0 = arith.constant 0 : i32
    return %arg0, %c0_i32 : i32, i32
  }
}

</mosaic_0001>

<bundles_post_ra>
// kernel: tpu_custom_call.1
= control target key start
LH: loop header
LB: loop body
LE: loop exit
PB: predicated region body
PF: predicated region fallthrough
CT: control target
= control target key end

     0   :  { %vm34_vm0 = vcmask 261120   ;;  %s478_s0 = inlined_call_operand.vmem [shape: f32[16,32], index: 0, kind: input, shape index: {}]   ;;  %s479_s1 = inlined_call_operand.vmem [shape: f32[1,32], index: 1, kind: input, shape index: {}]   ;;  %s480_s2 = inlined_call_operand.vmem [shape: f32[1,32], index: 2, kind: input, shape index: {}]   ;;  %s481_s3 = inlined_call_operand.vmem [shape: bf16[32,64], index: 3, kind: input, shape index: {}]   ;;  %s482_s4 = inlined_call_operand.vmem [shape: f32[1,64], index: 4, kind: input, shape index: {}]   ;;  %s483_s5 = inlined_call_operand.vmem [shape: bf16[64,32], index: 5, kind: input, shape index: {}]   ;;  %s484_s6 = inlined_call_operand.vmem [shape: f32[1,32], index: 6, kind: input, shape index: {}]   ;;  %s485_s7 = inlined_call_operand.hbm [shape: f32[16,32], index: 7, kind: output, shape index: {}]  }
   0x1   :  { %v421_v0 = vld [vmem:[%s478_s0] sm:$0xff]  ;;  %v426_v1 = vld [vmem:[%s478_s0 + $0x8] sm:$0xff] }
   0x2   :  { %v35_v2 = vsel %vm34_vm0, %v421_v0, 0.0  ;;  %v38_v3 = vsel %vm34_vm0, %v426_v1, 0.0 }
   0x3   :  { %36 = vadd.xlane.f32.xlu0 %v35_v2 }
   0x4   :  { %12 = vsyncpa [#allocation5], 0  ;;  %v340_v14 = vld [vmem:[%s481_s3 + $0x8] sm:$0xff]   ;;  %v373_v15 = vmov 0.0   ;;  %vm374_vm1 = vmmov 0   ;;  %v341_v16 = vld [vmem:[%s481_s3] sm:$0xff]  }
   0x5   :  { %315 = vmatprep.subr.bf16.mxu0 %v373_v15  ;;  %91 = vst.msk [vmem:[#allocation3] sm:$0xff] %vm34_vm0, %v373_v15  ;;  %92 = vst.msk [vmem:[#allocation3 + $0x8] sm:$0xff] %vm34_vm0, %v373_v15  ;;  %319 = vmatprep.mubr.msk.bf16.mxu0 %vm374_vm1, %v373_v15  ;;  %v343_v17 = vld [vmem:[%s483_s5 + $0x18] sm:$0xff]   ;;  %v290_v25 = vld [vmem:[%s479_s1] ss:$0 sm:$0xff]  ;;  %vm88_vm2 = vcmask 257024  }
   0x6   :  { %316 = vmatpush3.bf16.msra.mxu0 %v340_v14  ;;  %323 = vmatprep.subr.bf16.mxu1 %v373_v15  ;;  %v291_v27 = vld [vmem:[%s480_s2] ss:$0 sm:$0xff]  ;;  %v344_v37 = vld [vmem:[%s483_s5 + $0x10] sm:$0xff]   ;;  %v345_v38 = vld [vmem:[%s483_s5 + $0x8] sm:$0xff]   ;;  %vm205_vm3 = vcmask 523264   ;;  %s375_s19 = smov [#allocation4]  }
   0x7   :  { %39 = vadd.xlane.f32.xlu0 %v38_v3  ;;  %317 = vmatprep.subr.bf16.mxu0 %v373_v15  ;;  %v346_v39 = vld [vmem:[%s483_s5] sm:$0xff]   ;;  %s279_s20 = sshll.u32 %s375_s19, 4  ;;  %s280_s20 = int_to_ptr.vmem [resolvable:$true] %s279_s20 }
   0x8   :  { %331 = vmatprep.mubr.msk.bf16.mxu1 %vm374_vm1, %v373_v15  ;;  %324 = vmatpush3.bf16.msra.mxu1 %v343_v17  ;;  %v294_v40 = vld [vmem:[%s482_s4] ss:$0 sm:$0xff]  ;;  %s351_s21 = scalar_lea.vmem %s280_s20, 256  ;;  %p356_p1 = scmp.lt.s32.totalorder %s280_s20, %s280_s20 }
   0x9   :  { %325 = vmatprep.subr.bf16.mxu1 %v373_v15  ;;  %v304_v59 = vld [vmem:[%s484_s6] ss:$0 sm:$0xff]  ;;  %p352_p0 = scmp.ne.s32.totalorder %s280_s20, %s351_s21  ;;  %p357_p2 = scmp.lt.s32.totalorder %s351_s21, %s351_s21 }
   0xa   :  { %318 = vmatpush3.bf16.msra.mxu0 %v341_v16 }
   0xb   :  { %p358_p3 = por %p357_p2, %p356_p1 }
   0xc   :  { %326 = vmatpush3.bf16.msra.mxu1 %v344_v37  ;;  %v170_v50 = vld [vmem:[#allocation3] sm:$0xff]  ;;  %v171_v54 = vld [vmem:[#allocation3 + $0x8] sm:$0xff] }
   0xd   :  { %327 = vmatprep.subr.bf16.mxu1 %v373_v15  ;;  %p359_p4 = pnand %p358_p3, %p352_p0 }
  0x10   :  { %328 = vmatpush3.bf16.msra.mxu1 %v345_v38 }
  0x11   :  { %329 = vmatprep.subr.bf16.mxu1 %v373_v15 }
  0x14   :  { %330 = vmatpush3.bf16.msra.mxu1 %v346_v39 }
  0x8c   :  { %v37_v4 = vpop.xlane.xlu0 %36 }
  0x8d   :  { %v42_v5 = vmul.f32 0.03125, %v37_v4 }
  0x8f   :  { %v44_v6 = vsub.f32 %v421_v0, %v42_v5 }
  0x90   :  { %v40_v7 = vpop.xlane.xlu0 %39 }
  0x91   :  { %v43_v8 = vmul.f32 0.03125, %v40_v7  ;;  %v46_v9 = vmul.f32 %v44_v6, %v44_v6 }
  0x93   :  { %v45_v10 = vsub.f32 %v426_v1, %v43_v8  ;;  %v48_v11 = vsel %vm34_vm0, %v46_v9, 0.0 }
  0x94   :  { %49 = vadd.xlane.f32.xlu1 %v48_v11 }
  0x95   :  { %v47_v12 = vmul.f32 %v45_v10, %v45_v10 }
  0x97   :  { %v51_v13 = vsel %vm34_vm0, %v47_v12, 0.0 }
  0x98   :  { %52 = vadd.xlane.f32.xlu1 %v51_v13 }
 0x11d   :  { %v50_v18 = vpop.xlane.xlu1 %49 }
 0x11e   :  { %v54_v19 = vmul.f32 0.03125, %v50_v18 }
 0x120   :  { %v56_v20 = vadd.f32 1e-05, %v54_v19 }
 0x121   :  { %v53_v21 = vpop.xlane.xlu1 %52 }
 0x122   :  { %347 = vrsqrt.f32 %v56_v20  ;;  %v55_v22 = vmul.f32 0.03125, %v53_v21 }
 0x124   :  { %v57_v23 = vadd.f32 1e-05, %v55_v22 }
 0x126   :  { %349 = vrsqrt.f32 %v57_v23 }
 0x12f   :  { %v348_v24 = vpop.eup %347 }
 0x130   :  { %v60_v26 = vmul.f32 %v348_v24, %v44_v6 }
 0x132   :  { %v69_v28 = vmul.f32 %v290_v25, %v60_v26 }
 0x133   :  { %v350_v29 = vpop.eup %349 }
 0x134   :  { %v78_v30 = vadd.f32 %v291_v27, %v69_v28  ;;  %v61_v31 = vmul.f32 %v350_v29, %v45_v10 }
 0x136   :  { %v305_v32 = vpack.c.bf16 %v78_v30, %v78_v30  ;;  %v70_v33 = vmul.f32 %v290_v25, %v61_v31 }
 0x138   :  { %89 = vst.msk [vmem:[#allocation2] sm:$0xf] %vm88_vm2, %v305_v32  ;;  %v79_v34 = vadd.f32 %v291_v27, %v70_v33 }
 0x13a   :  { %v306_v35 = vpack.c.bf16 %v79_v34, %v79_v34 }
 0x13c   :  { %90 = vst.msk [vmem:[#allocation2 + $0x4] sm:$0xf] %vm88_vm2, %v306_v35 }
 0x143   :  { %v342_v36 = vld [vmem:[#allocation2] sm:$0xff]  }
 0x144   :  { %320 = vmatmul.mubr.msk.bf16.vlgmr.msra.gmra.mxu0 %vm34_vm0, %v342_v36 }
 0x204   :  { %v161_v41 = vpop.f32.mrf.mxu0 }
 0x205   :  { %v162_v43 = vadd.f32 %v294_v40, %v161_v41 }
 0x206   :  { %v321_v42 = vpop.f32.mrf.mxu0 }
 0x207   :  { %v168_v47 = vmax.f32 %v162_v43, 0.0 }
 0x208   :  { %v164_v44 = vpop.f32.mrf.mxu0 }
 0x209   :  { %v165_v45 = vadd.f32 %v294_v40, %v164_v44 }
 0x20a   :  { %v322_v46 = vpop.f32.mrf.mxu0 }
 0x20b   :  { %v169_v48 = vmax.f32 %v165_v45, 0.0 }
 0x20d   :  { %v172_v49 = vpack.c.bf16 %v169_v48, %v168_v47 }
 0x20f   :  { %332 = vmatmul.mubr.msk.bf16.vlgmr.msra.gmra.mxu1 %vm205_vm3, %v172_v49 }
 0x2cf   :  { %v243_v51 = vpop.f32.mrf.mxu1 }
 0x2d0   :  { %v250_v52 = vadd.f32 %v243_v51, %v170_v50 }
 0x2d1   :  { %v333_v53 = vpop.f32.mrf.mxu1 }
 0x2d2   :  { %252 = vst.msk [vmem:[#allocation3] sm:$0xff] %vm34_vm0, %v250_v52 }
 0x2d3   :  { %v246_v55 = vpop.f32.mrf.mxu1 }
 0x2d4   :  { %v251_v56 = vadd.f32 %v246_v55, %v171_v54 }
 0x2d5   :  { %v334_v57 = vpop.f32.mrf.mxu1 }
 0x2d6   :  { %253 = vst.msk [vmem:[#allocation3 + $0x8] sm:$0xff] %vm34_vm0, %v251_v56 }
 0x2d9   :  { %v259_v58 = vld [vmem:[#allocation3] sm:$0xff] }
 0x2da   :  { %v261_v60 = vadd.f32 %v259_v58, %v421_v0 }
 0x2dc   :  { %v270_v61 = vadd.f32 %v304_v59, %v261_v60 }
 0x2dd   :  { %v260_v62 = vld [vmem:[#allocation3 + $0x8] sm:$0xff] }
 0x2de   :  { %v262_v63 = vadd.f32 %v260_v62, %v426_v1  ;;  %272 = vst.msk [vmem:[#allocation4] sm:$0xff] %vm34_vm0, %v270_v61 }
 0x2e0   :  { %v271_v2 = vadd.f32 %v304_v59, %v262_v63 }
 0x2e2   :  { %273 = vst.msk [vmem:[#allocation4 + $0x8] sm:$0xff] %vm34_vm0, %v271_v2 }
 0x2e3   :  { %362 = shalt.err (!%p359_p4)
}
 0x2e4   :  { %s376_s6 = smov 128   ;;  %s377_s22 = smov 8  }
 0x2e5   :  { %285 = dma.vmem_to_hbm [thread:$0]  %s280_s20, 256, %s485_s7, [#allocation5], %s376_s6, %s376_s6, %s377_s22  }
 0x2e6   :  { %371 = dma.done.wait [#allocation5], 256  }
 0x2e7   :  { %372 = vsyncadd [#allocation5], 4294967040 }
 0x2e8   :  { %289 = vsyncpa [#allocation5], 1 }

</bundles_post_ra>
